<compile_context>
chip_gen: v5e
topology: v5e:2x2
jax: 0.10.0
libtpu: 0.0.40
codegen_flags: <defaults>
</compile_context>

<pallas_src>
import jax
import jax.numpy as jnp
from jax.experimental import pallas as pl
from jax.experimental.pallas import tpu as pltpu


def get_conv_params(in_dim, out_dim,
                    stride=(1, 2, 3, 4, 5),
                    kernel_size=(3, 5, 7, 9),
                    padding=(0, 1, 2),
                    dilation=(1, 2)):
    """Python port of the reference parameter search (same priority order)."""
    for d in dilation:
        for p in padding:
            for s in stride:
                for k in kernel_size:
                    res = int((in_dim + 2 * p - d * (k - 1) - 1) / s + 1)
                    if res == out_dim:
                        return {'kernel_size': k, 'stride': s,
                                'padding': p, 'dilation': d}
    return None


def _conv_matmul_kernel(w_ref, cols_ref, b_ref, o_ref):
    """Weight-stationary conv-as-matmul.

    w_ref    : (Cout, KKC)  flattened filters (f32 or bf16), resident
    cols_ref : (KKC, TM)    im2col'd columns (lane-dense)
    b_ref    : (Cout, 1)    bias, f32, resident
    o_ref    : (Cout, TM)   output tile (lane-dense, unmasked stores)
    """
    acc = jnp.dot(w_ref[...], cols_ref[...],
                  preferred_element_type=jnp.float32)        # MXU, f32 acc
    o_ref[...] = (acc + b_ref[...]).astype(o_ref.dtype)


def _pick_tile_m(M):
    """Lane-tile size (multiple of 128) for the M = B*OH*OW axis."""
    m128 = ((M + 127) // 128) * 128
    if m128 <= 512:
        # Single grid step: a 2nd step's ~0.35us fixed cost exceeds the
        # compute at these sizes.
        return m128
    # >= 2 grid steps so both v7x TensorCores get work ("parallel" axis),
    # tiles >= 512 lanes (~85% of HBM roofline) and <= 4096
    # (~1.4 MB per double-buffered column tile; fits every generation).
    half = ((m128 // 2 + 127) // 128) * 128
    return max(512, min(4096, half))


def reshaper_forward(x_nchw, weight, bias, params, *,
                     compute_dtype=jnp.bfloat16, out_layout="NCHW"):
    """Conv2d forward matching nn.Conv2d(...) semantics.

    x_nchw : (B, Cin, H, W)    float32
    weight : (Cout, Cin, K, K) float32 (PyTorch layout)
    bias   : (Cout,)           float32
    compute_dtype : MXU operand dtype (bf16 default; accumulation stays f32)
    out_layout : "NCHW" (default, == nn.Conv2d) or "CNHW" (channels-leading,
        skips the final full-output transpose for consumers that can fuse it)
    """
    K = params['kernel_size']
    S = params['stride']
    P = params['padding']
    D = params['dilation']

    B, Cin, H, W = x_nchw.shape
    Cout = weight.shape[0]
    OH = (H + 2 * P - D * (K - 1) - 1) // S + 1
    OW = (W + 2 * P - D * (K - 1) - 1) // S + 1
    KKC = Cin * K * K
    M = B * OH * OW

    # ---- wrapper-side im2col: one fused channel-major layout chain ---------
    # Cast FIRST (halves layout + DMA bytes on the bf16 path), then go
    # channel-major so a single reshape yields (KKC, M) directly.
    x = jnp.transpose(x_nchw.astype(compute_dtype), (1, 0, 2, 3))   # (Cin,B,H,W)
    if P > 0:
        # TODO(synk): for P>0 handle the halo inside the kernel (over-fetch +
        # pl.when masking) instead of a padded HBM copy.
        x = jnp.pad(x, ((0, 0), (0, 0), (P, P), (P, P)))

    taps = []
    for kh in range(K):
        for kw in range(K):
            h0, w0 = kh * D, kw * D
            taps.append(x[:, :, h0:h0 + S * (OH - 1) + 1:S,
                              w0:w0 + S * (OW - 1) + 1:S])          # (Cin,B,OH,OW)
    # (Cin, K*K, B, OH, OW) -> (KKC, M): KKC ordered (cin, kh, kw) which
    # matches PyTorch's weight.reshape(Cout, Cin*K*K); M ordered (b, oh, ow).
    cols = jnp.stack(taps, axis=1).reshape(KKC, M)

    TM = _pick_tile_m(M)
    M_pad = ((M + TM - 1) // TM) * TM
    if M_pad != M:
        cols = jnp.pad(cols, ((0, 0), (0, M_pad - M)))              # lane-dense pad

    w_flat = weight.reshape(Cout, KKC).astype(compute_dtype)        # no transpose
    b_col = bias.reshape(Cout, 1).astype(jnp.float32)

    itemsize = jnp.dtype(compute_dtype).itemsize
    cost = pl.CostEstimate(
        flops=2 * Cout * KKC * M_pad,
        transcendentals=0,
        bytes_accessed=(KKC * M_pad * itemsize            # cols
                        + Cout * KKC * itemsize           # weights
                        + Cout * 4                        # bias
                        + Cout * M_pad * x_nchw.dtype.itemsize),  # output
    )

    out_cm = pl.pallas_call(
        _conv_matmul_kernel,
        out_shape=jax.ShapeDtypeStruct((Cout, M_pad), x_nchw.dtype),
        grid_spec=pltpu.PrefetchScalarGridSpec(
            num_scalar_prefetch=0,
            grid=(M_pad // TM,),
            in_specs=[
                pl.BlockSpec((Cout, KKC), lambda i: (0, 0)),   # weights, resident
                pl.BlockSpec((KKC, TM), lambda i: (0, i)),     # column tile
                pl.BlockSpec((Cout, 1), lambda i: (0, 0)),     # bias, resident
            ],
            out_specs=pl.BlockSpec((Cout, TM), lambda i: (0, i)),
        ),
        compiler_params=pltpu.CompilerParams(
            dimension_semantics=("parallel",),
            # v7x: 64 MiB physical VMEM (32 MiB scoped default); v5e scoped
            # default is only 16 MiB. 32 MiB is safe on every generation and
            # leaves headroom if TM / buffer depth ever grows.
            vmem_limit_bytes=32 * 1024 * 1024,
        ),
        cost_estimate=cost,
    )(w_flat, cols, b_col)

    out = out_cm[:, :M].reshape(Cout, B, OH, OW)                    # channels-leading
    if out_layout == "CNHW":
        return out                       # consumer fuses / accepts (Cout,B,OH,OW)
    return jnp.transpose(out, (1, 0, 2, 3))                         # NCHW (nn.Conv2d)


if __name__ == "__main__":
    # Small shapes consistent with the module: in_channels=4, out_channels=8,
    # in_dims=16 -> out_dims=14 (auto params: k=3, s=1, p=0, d=1).
    B, Cin, Cout = 2, 4, 8
    in_dims, out_dims = 16, 14
    params = get_conv_params(in_dims, out_dims)
    assert params is not None

    key = jax.random.PRNGKey(0)
    kx, kw, kb = jax.random.split(key, 3)

    x = jax.random.normal(kx, (B, Cin, in_dims, in_dims), dtype=jnp.float32)

    K = params['kernel_size']
    fan_in = Cin * K * K
    bound = 1.0 / (fan_in ** 0.5)
    weight = jax.random.uniform(kw, (Cout, Cin, K, K),
                                minval=-bound, maxval=bound, dtype=jnp.float32)
    bias = jax.random.uniform(kb, (Cout,), minval=-bound, maxval=bound,
                              dtype=jnp.float32)

    # Reference: XLA's conv (NCHW, OIHW) in f32.
    ref = jax.lax.conv_general_dilated(
        x, weight,
        window_strides=(params['stride'],) * 2,
        padding=[(params['padding'], params['padding'])] * 2,
        rhs_dilation=(params['dilation'],) * 2,
        dimension_numbers=('NCHW', 'OIHW', 'NCHW'),
    ) + bias[None, :, None, None]

    # Default path: bf16 MXU operands (v6e/v7x native), f32 accumulation.
    out_bf16 = jax.block_until_ready(reshaper_forward(x, weight, bias, params))
    assert out_bf16.shape == (B, Cout, out_dims, out_dims), out_bf16.shape
    assert jnp.allclose(out_bf16, ref, atol=5e-2, rtol=5e-2)

    # f32 operand path: exact check.
    out_f32 = jax.block_until_ready(
        reshaper_forward(x, weight, bias, params, compute_dtype=jnp.float32))
    assert jnp.allclose(out_f32, ref, atol=1e-4, rtol=1e-4)

    # Channels-leading output path (skips the final full-output transpose).
    out_cf = jax.block_until_ready(
        reshaper_forward(x, weight, bias, params, compute_dtype=jnp.float32,
                         out_layout="CNHW"))
    assert jnp.allclose(out_cf, jnp.transpose(ref, (1, 0, 2, 3)),
                        atol=1e-4, rtol=1e-4)

    print("KERNEL_OK")
</pallas_src>

<mosaic_0001>
module attributes {stable_mosaic.version = 11 : i64} {
  func.func @_conv_matmul_kernel(%arg0: i32, %arg1: memref<8x36xbf16, #tpu.memory_space<vmem>>, %arg2: memref<36x512xbf16, #tpu.memory_space<vmem>>, %arg3: memref<8x1xf32, #tpu.memory_space<vmem>>, %arg4: memref<8x512xf32, #tpu.memory_space<vmem>>) attributes {dimension_semantics = [#tpu.dimension_semantics<parallel>], iteration_bounds = array<i64: 1>, scalar_prefetch = 0 : i64, scratch_operands = 0 : i64, tpu.core_type = #tpu.core_type<tc>, window_params = [{pipeline_mode = #tpu.pipeline_mode<synchronous>, transform_indices = @transform_0, window_bounds = array<i64: 8, 36>}, {transform_indices = @transform_1, window_bounds = array<i64: 36, 512>}, {pipeline_mode = #tpu.pipeline_mode<synchronous>, transform_indices = @transform_2, window_bounds = array<i64: 8, 1>}, {transform_indices = @transform_3, window_bounds = array<i64: 8, 512>}]} {
    %c0 = arith.constant 0 : index
    %c0_0 = arith.constant 0 : index
    %0 = vector.load %arg1[%c0, %c0_0] : memref<8x36xbf16, #tpu.memory_space<vmem>>, vector<8x36xbf16>
    %c0_1 = arith.constant 0 : index
    %c0_2 = arith.constant 0 : index
    %1 = vector.load %arg2[%c0_1, %c0_2] : memref<36x512xbf16, #tpu.memory_space<vmem>>, vector<36x512xbf16>
    %cst = arith.constant dense<0.000000e+00> : vector<8x512xf32>
    %2 = tpu.matmul %0, %1, %cst {dimension_numbers = #tpu.dot_dimension_numbers<[1], [0], [0], [1], [0, 0, 1, 1], [], []>} : vector<8x36xbf16>, vector<36x512xbf16>, vector<8x512xf32> -> vector<8x512xf32>
    %c0_3 = arith.constant 0 : index
    %c0_4 = arith.constant 0 : index
    %3 = vector.load %arg3[%c0_3, %c0_4] : memref<8x1xf32, #tpu.memory_space<vmem>>, vector<8x1xf32>
    %4 = vector.broadcast %3 : vector<8x1xf32> to vector<8x512xf32>
    %5 = arith.addf %2, %4 : vector<8x512xf32>
    %c0_5 = arith.constant 0 : index
    %c0_6 = arith.constant 0 : index
    %6 = vector.load %arg4[%c0_5, %c0_6] : memref<8x512xf32, #tpu.memory_space<vmem>>, vector<8x512xf32>
    tpu.vector_store %arg4[%c0_5, %c0_6], %5 {strides = array<i32>} : memref<8x512xf32, #tpu.memory_space<vmem>>, vector<8x512xf32>,
    return
  }
  func.func @transform_0(%arg0: i32) -> (i32, i32) {
    %c0_i32 = arith.constant 0 : i32
    %c0_i32_0 = arith.constant 0 : i32
    %c0_i32_1 = arith.constant 0 : i32
    return %c0_i32, %c0_i32_0 : i32, i32
  }
  func.func @transform_1(%arg0: i32) -> (i32, i32) {
    %c0_i32 = arith.constant 0 : i32
    %c0_i32_0 = arith.constant 0 : i32
    return %c0_i32, %arg0 : i32, i32
  }
  func.func @transform_2(%arg0: i32) -> (i32, i32) {
    %c0_i32 = arith.constant 0 : i32
    %c0_i32_0 = arith.constant 0 : i32
    %c0_i32_1 = arith.constant 0 : i32
    return %c0_i32, %c0_i32_0 : i32, i32
  }
  func.func @transform_3(%arg0: i32) -> (i32, i32) {
    %c0_i32 = arith.constant 0 : i32
    %c0_i32_0 = arith.constant 0 : i32
    return %c0_i32, %arg0 : i32, i32
  }
}

</mosaic_0001>

<bundles_post_ra>
// kernel: tpu_custom_call.1
= control target key start
LH: loop header
LB: loop body
LE: loop exit
PB: predicated region body
PF: predicated region fallthrough
CT: control target
= control target key end

     0   :  { %8 = vsyncpa [#allocation3], 0  ;;  %s332_s0 = inlined_call_operand.vmem [shape: bf16[8,36], index: 0, kind: input, shape index: {}]   ;;  %s333_s1 = inlined_call_operand.hbm [shape: bf16[36,512], index: 1, kind: input, shape index: {}]   ;;  %s334_s2 = inlined_call_operand.vmem [shape: f32[8,1], index: 2, kind: input, shape index: {}]   ;;  %s335_s3 = inlined_call_operand.hbm [shape: f32[8,512], index: 3, kind: output, shape index: {}]  }
   0x1   :  { %9 = vsyncpa [#allocation4], 0  ;;  %s16_s14 = sshll.u32 %s333_s1, 4  ;;  %s291_s15 = smov [#allocation2]   ;;  %s17_s14 = int_to_ptr.hbm [resolvable:$true] %s16_s14 }
   0x2   :  { %s18_s16 = sshll.u32 %s291_s15, 4  ;;  %s292_s17 = smov 256   ;;  %s19_s16 = int_to_ptr.vmem [resolvable:$true] %s18_s16 }
   0x3   :  { %s293_s18 = smov 16  }
   0x4   :  { %24 = dma.hbm_to_vmem [thread:$0]  %s17_s14, 1280, %s19_s16, [#allocation3], %s292_s17, %s292_s17, %s293_s18  }
   0x5   :  { %287 = dma.done.wait [#allocation3], 1280  }
   0x6   :  { %288 = vsyncadd [#allocation3], 4294966016  ;;  %v294_v0 = vmov 0   ;;  %v41_v1 = vld [vmem:[#allocation2 + $0x40] sm:$0x33]  ;;  %vm103_vm0 = vcmask 1041408  }
   0x7   :  { %238 = vset.pattern.permute.xlu0 %v294_v0  ;;  %v42_v2 = vld [vmem:[#allocation2 + $0x48] sm:$0x33]  ;;  %v75_v3 = vunpack.c.l.b16 %v41_v1  ;;  %v76_v4 = vunpack.c.h.b16 %v41_v1  ;;  %v207_v7 = vld [vmem:[#allocation2 + $0x20] sm:$0xf]  ;;  %v231_v8 = vld [vmem:[#allocation2 + $0x2c] sm:$0xf0] }
   0x8   :  { %v77_v5 = vunpack.c.l.b16 %v42_v2  ;;  %v78_v6 = vunpack.c.h.b16 %v42_v2  ;;  %v229_v13 = vld [vmem:[#allocation2 + $0x24] sm:$0xf]  ;;  %v209_v14 = vld [vmem:[#allocation2 + $0x30] sm:$0xf0]  ;;  %v215_v15 = vld [vmem:[#allocation2 + $0x28] sm:$0xf]  ;;  %v208_v23 = vor.u32 %v231_v8, %v207_v7 }
   0x9   :  { %v87_v9 = vpack.c.b16 %v75_v3, %v75_v3  ;;  %v88_v10 = vpack.c.b16 %v76_v4, %v76_v4  ;;  %v232_v16 = vld [vmem:[#allocation2 + $0x34] sm:$0xf0]  ;;  %v230_v17 = vld [vmem:[#allocation2 + $0x2c] sm:$0xf]  ;;  %v217_v18 = vld [vmem:[#allocation2 + $0x38] sm:$0xf0]  ;;  %v212_v24 = vor.u32 %v229_v13, %v209_v14 }
   0xa   :  { %v89_v11 = vpack.c.b16 %v77_v5, %v77_v5  ;;  %v90_v12 = vpack.c.b16 %v78_v6, %v78_v6  ;;  %v191_v25 = vld [vmem:[#allocation2] sm:$0xf]  ;;  %v227_v26 = vld [vmem:[#allocation2 + $0xc] sm:$0xf0]  ;;  %v225_v27 = vld [vmem:[#allocation2 + $0x4] sm:$0xf]  ;;  %v216_v28 = vor.u32 %v232_v16, %v215_v15  ;;  %v220_v29 = vor.u32 %v230_v17, %v217_v18 }
   0xb   :  { %v105_v19 = vsel %vm103_vm0, %v87_v9, 0  ;;  %v108_v20 = vsel %vm103_vm0, %v88_v10, 0  ;;  %v193_v30 = vld [vmem:[#allocation2 + $0x10] sm:$0xf0]  ;;  %v199_v31 = vld [vmem:[#allocation2 + $0x8] sm:$0xf]  ;;  %v192_v36 = vor.u32 %v227_v26, %v191_v25 }
   0xc   :  { %v111_v21 = vsel %vm103_vm0, %v89_v11, 0  ;;  %v114_v22 = vsel %vm103_vm0, %v90_v12, 0  ;;  %121 = vmatpush.bf16.msra.mxu0 %v105_v19  ;;  %134 = vmatpush.bf16.msra.mxu1 %v108_v20  ;;  %v43_v32 = vld [vmem:[%s334_s2] sm:$0xff]  ;;  %v228_v33 = vld [vmem:[#allocation2 + $0x14] sm:$0xf0]  ;;  %v196_v37 = vor.u32 %v225_v27, %v193_v30  ;;  %vm99_vm1 = vcmask 293888  }
   0xd   :  { %147 = vmatpush.bf16.msra.mxu2 %v111_v21  ;;  %160 = vmatpush.bf16.msra.mxu3 %v114_v22  ;;  %v226_v34 = vld [vmem:[#allocation2 + $0xc] sm:$0xf]  ;;  %v201_v35 = vld [vmem:[#allocation2 + $0x18] sm:$0xf0]  ;;  %v200_v38 = vor.u32 %v228_v33, %v199_v31  ;;  %v32_v40 = vld [vmem:[%s332_s0] sm:$0xf] }
   0xe   :  { %46 = vperm.xlu0 %238, %v43_v32   ;;  %v204_v39 = vor.u32 %v226_v34, %v201_v35  ;;  %s295_s2 = smov [#allocation5]   ;;  %s179_s0 = sshll.u32 %s335_s3, 4  ;;  %s180_s0 = int_to_ptr.hbm [resolvable:$true] %s179_s0 }
   0xf   :  { %s177_s22 = sshll.u32 %s295_s2, 4  ;;  %s178_s22 = int_to_ptr.vmem [resolvable:$true] %s177_s22 }
  0x10   :  { %122 = vmatpush.bf16.msra.mxu0 %v208_v23  ;;  %135 = vmatpush.bf16.msra.mxu1 %v212_v24 }
  0x11   :  { %148 = vmatpush.bf16.msra.mxu2 %v216_v28  ;;  %161 = vmatpush.bf16.msra.mxu3 %v220_v29 }
  0x14   :  { %123 = vmatpush.bf16.msra.mxu0 %v192_v36  ;;  %136 = vmatpush.bf16.msra.mxu1 %v196_v37 }
  0x15   :  { %149 = vmatpush.bf16.msra.mxu2 %v200_v38  ;;  %162 = vmatpush.bf16.msra.mxu3 %v204_v39 }
  0x17   :  { %221 = vmatmul.msk.bf16.vlgmr.msra.gmra.mxu0 %vm99_vm1, %v32_v40  ;;  %222 = vmatmul.msk.bf16.vlgmr.msra.gmra.mxu1 %vm99_vm1, %v32_v40 }
  0x18   :  { %223 = vmatmul.msk.bf16.vlgmr.msra.gmra.mxu2 %vm99_vm1, %v32_v40  ;;  %224 = vmatmul.msk.bf16.vlgmr.msra.gmra.mxu3 %vm99_vm1, %v32_v40 }
  0x80   :  { %v47_v41 = vpop.permute.xlu0 %46 }
  0x94   :  { %v125_v42 = vpop.f32.mrf.mxu0  ;;  %v138_v43 = vpop.f32.mrf.mxu1 }
  0x95   :  { %v126_v44 = vadd.f32 %v125_v42, %v47_v41  ;;  %v139_v45 = vadd.f32 %v138_v43, %v47_v41 }
  0x97   :  { %168 = vst [vmem:[#allocation5] sm:$0xff] %v126_v44 }
  0x98   :  { %169 = vst [vmem:[#allocation5 + $0x8] sm:$0xff] %v139_v45 }
  0x9b   :  { %v151_v46 = vpop.f32.mrf.mxu2  ;;  %v164_v47 = vpop.f32.mrf.mxu3 }
  0x9c   :  { %v152_v48 = vadd.f32 %v151_v46, %v47_v41  ;;  %v165_v49 = vadd.f32 %v164_v47, %v47_v41  ;;  %v127_v50 = vpop.f32.mrf.mxu0  ;;  %v140_v51 = vpop.f32.mrf.mxu1 }
  0x9e   :  { %170 = vst [vmem:[#allocation5 + $0x10] sm:$0xff] %v152_v48 }
  0x9f   :  { %171 = vst [vmem:[#allocation5 + $0x18] sm:$0xff] %v165_v49 }
  0xa0   :  { %182 = dma.vmem_to_hbm [thread:$0]  %s178_s22, 512, %s180_s0, [#allocation4]  }
  0xa3   :  { %v153_v52 = vpop.f32.mrf.mxu2  ;;  %v166_v53 = vpop.f32.mrf.mxu3 }
  0xa4   :  { %289 = dma.done.wait [#allocation4], 512  }
  0xa5   :  { %290 = vsyncadd [#allocation4], 4294966784 }
  0xa6   :  { %187 = vsyncpa [#allocation3], 1 }
  0xa7   :  { %188 = vsyncpa [#allocation4], 1 }

</bundles_post_ra>
